<compile_context>
chip_gen: v7x
topology: tpu7x:2x2x1
jax: 0.10.0
libtpu: 0.0.40
codegen_flags: <defaults>
</compile_context>

<pallas_src>
import jax
import jax.numpy as jnp
from jax.experimental import pallas as pl
from jax.experimental.pallas import tpu as pltpu


def _attention_kernel(x_ref, w_ref, out_ref):
    # x_ref:   (Bt, S, E) input tile (native dtype)
    # w_ref:   (1, 1, E)  resident lane-dense weight (float32)
    # out_ref: (Bt, E)    pooled output tile
    x = x_ref[...]                                        # native dtype, no full-tile upcast
    w = w_ref[...]                                        # (1, 1, E) float32

    # scores kept in the block's native (Bt, S, 1) sublane-major layout so the later
    # alpha broadcast onto (Bt, S, E) is a cheap lane broadcast (no XLU relayout).
    scores = jnp.sum(x * w, axis=-1, keepdims=True)       # (Bt, S, 1) float32

    # Numerically stable softmax over the sequence axis (axis=1). Exact divide:
    # this kernel is DMA-bound, so the divide is free and matches the reference.
    m = jnp.max(scores, axis=1, keepdims=True)            # (Bt, 1, 1)
    e = jnp.exp(scores - m)                               # (Bt, S, 1)
    denom = jnp.sum(e, axis=1, keepdims=True)             # (Bt, 1, 1)
    alpha = e / denom                                     # (Bt, S, 1) float32

    # Weighted pooling: big elementwise multiply in the input dtype (bf16-friendly
    # on v6e/v7x), accumulate the S-reduction in float32.
    prod = x * alpha.astype(x_ref.dtype)                  # (Bt, S, E)
    pooled = jnp.sum(prod.astype(jnp.float32), axis=1)    # (Bt, E) float32
    out_ref[...] = pooled.astype(out_ref.dtype)

    # TODO(synk): mask handling (masks != None branch) not implemented — the module
    # is exercised with masks=None in the reproduced forward path.


def _round_up(x, m):
    return ((x + m - 1) // m) * m


def _tpu_generation():
    try:
        kind = jax.devices()[0].device_kind.lower()
    except Exception:
        return None
    for tag in ("v7", "v6", "v5"):
        if tag in kind:
            return tag
    return None


def _tuning():
    """Per-generation (input-block target bytes, scoped VMEM limit bytes)."""
    gen = _tpu_generation()
    if gen == "v7":
        # 3.2 TB/s HBM: 12 MiB blocks amortize the ~0.35us/step grid overhead to <5%.
        # Peak ~ 2x12 (double buffer) + ~2x12 (f32 intermediates) = 48 MiB < 56 < 64 phys/TC.
        return 12 * 1024 * 1024, 56 * 1024 * 1024
    if gen == "v6":
        # ~1.4 TB/s: 8 MiB/step keeps overhead ~5%; plenty of headroom in 128 MiB phys.
        return 8 * 1024 * 1024, 64 * 1024 * 1024
    # v5e (16 MiB default scoped) and unknown chips: stay small and raise the limit a bit.
    return 2 * 1024 * 1024, 32 * 1024 * 1024


def _pick_batch_tile(B, S, E, itemsize, target_bytes):
    """Pick Bt so one input block is ~target_bytes, aligned to the sublane pack."""
    pack = {4: 8, 2: 16, 1: 32}.get(itemsize, 8)
    per_row = max(1, S * E * itemsize)
    bt = target_bytes // per_row
    bt = max(pack, (bt // pack) * pack)              # sublane-aligned, minimum one pack
    bt = min(bt, _round_up(B, pack))                 # never (much) bigger than the batch
    # Megacore (v7x): prefer >= 2 grid steps when the batch is large enough to split.
    if bt >= B and B > pack:
        half = _round_up(pl.cdiv(B, 2), pack)
        bt = max(pack, min(bt, half))
    return bt


def attention_forward(inputs, weight_W, masks=None):
    """inputs: (B, S, E), weight_W: (E, 1) -> (B, E)."""
    assert masks is None, "masks path not implemented in the Pallas kernel"
    B, S, E = inputs.shape
    assert weight_W.shape == (E, 1)

    target_bytes, vmem_limit = _tuning()
    bt = _pick_batch_tile(B, S, E, inputs.dtype.itemsize, target_bytes)
    n_tiles = pl.cdiv(B, bt)
    Bp = n_tiles * bt

    x = inputs
    if Bp != B:
        # Pad batch with zeros; padded rows produce harmless outputs that are sliced off.
        x = jnp.pad(inputs, ((0, Bp - B), (0, 0), (0, 0)))

    # Lane-dense resident weight: (E, 1) -> (1, 1, E), float32 for the softmax math.
    w_row = weight_W.reshape(1, 1, E).astype(jnp.float32)

    out = pl.pallas_call(
        _attention_kernel,
        out_shape=jax.ShapeDtypeStruct((Bp, E), inputs.dtype),
        grid_spec=pltpu.PrefetchScalarGridSpec(
            num_scalar_prefetch=0,
            grid=(n_tiles,),
            in_specs=[
                pl.BlockSpec((bt, S, E), lambda i: (i, 0, 0)),
                pl.BlockSpec((1, 1, E), lambda i: (0, 0, 0)),  # constant -> resident
            ],
            out_specs=pl.BlockSpec((bt, E), lambda i: (i, 0)),
        ),
        compiler_params=pltpu.CompilerParams(
            dimension_semantics=("parallel",),
            vmem_limit_bytes=vmem_limit,
        ),
    )(x, w_row)

    if Bp != B:
        out = out[:B]
    return out


def attention_reference(inputs, weight_W):
    scores = jnp.einsum("bse,eo->bso", inputs, weight_W)        # (B, S, 1)
    alpha = jax.nn.softmax(scores, axis=1)                      # softmax over seq
    return jnp.sum(inputs * alpha, axis=1)                      # (B, E)


if __name__ == "__main__":
    B, S, E = 2, 8, 32  # batch, seq, emb_size

    key = jax.random.PRNGKey(0)
    k_x, k_w = jax.random.split(key)
    inputs = jax.random.normal(k_x, (B, S, E), dtype=jnp.float32)
    # Deterministic stand-in for torch.randn(emb_size, 1)
    weight_W = jax.random.normal(k_w, (E, 1), dtype=jnp.float32)

    out = attention_forward(inputs, weight_W)
    out = jax.block_until_ready(out)

    ref = attention_reference(inputs, weight_W)
    assert out.shape == (B, E)
    assert jnp.allclose(out, ref, atol=1e-5, rtol=1e-5), "mismatch vs reference"

    print("KERNEL_OK")
</pallas_src>

<mosaic_0001>
module attributes {stable_mosaic.version = 11 : i64} {
  func.func @_attention_kernel(%arg0: i32, %arg1: memref<8x8x32xf32, #tpu.memory_space<vmem>>, %arg2: memref<1x1x32xf32, #tpu.memory_space<vmem>>, %arg3: memref<8x32xf32, #tpu.memory_space<vmem>>) attributes {dimension_semantics = [#tpu.dimension_semantics<parallel>], iteration_bounds = array<i64: 1>, scalar_prefetch = 0 : i64, scratch_operands = 0 : i64, tpu.core_type = #tpu.core_type<tc>, window_params = [{transform_indices = @transform_0, window_bounds = array<i64: 8, 8, 32>}, {pipeline_mode = #tpu.pipeline_mode<synchronous>, transform_indices = @transform_1, window_bounds = array<i64: 1, 1, 32>}, {transform_indices = @transform_2, window_bounds = array<i64: 8, 32>}]} {
    %c0 = arith.constant 0 : index
    %c0_0 = arith.constant 0 : index
    %c0_1 = arith.constant 0 : index
    %0 = vector.load %arg1[%c0, %c0_0, %c0_1] : memref<8x8x32xf32, #tpu.memory_space<vmem>>, vector<8x8x32xf32>
    %c0_2 = arith.constant 0 : index
    %c0_3 = arith.constant 0 : index
    %c0_4 = arith.constant 0 : index
    %1 = vector.load %arg2[%c0_2, %c0_3, %c0_4] : memref<1x1x32xf32, #tpu.memory_space<vmem>>, vector<1x1x32xf32>
    %2 = vector.broadcast %1 : vector<1x1x32xf32> to vector<8x8x32xf32>
    %3 = arith.mulf %0, %2 : vector<8x8x32xf32>
    %cst = arith.constant dense<0.000000e+00> : vector<8x8xf32>
    %4 = vector.multi_reduction <add>, %3, %cst [2] : vector<8x8x32xf32> to vector<8x8xf32>
    %5 = vector.shape_cast %4 : vector<8x8xf32> to vector<8x8x1xf32>
    %cst_5 = arith.constant dense<0xFF800000> : vector<8x1xf32>
    %6 = vector.multi_reduction <maximumf>, %5, %cst_5 [1] : vector<8x8x1xf32> to vector<8x1xf32>
    %7 = vector.shape_cast %6 : vector<8x1xf32> to vector<8x1x1xf32>
    %8 = vector.broadcast %7 : vector<8x1x1xf32> to vector<8x8x1xf32>
    %9 = arith.subf %5, %8 : vector<8x8x1xf32>
    %10 = math.exp %9 : vector<8x8x1xf32>
    %cst_6 = arith.constant dense<0.000000e+00> : vector<8x1xf32>
    %11 = vector.multi_reduction <add>, %10, %cst_6 [1] : vector<8x8x1xf32> to vector<8x1xf32>
    %12 = vector.shape_cast %11 : vector<8x1xf32> to vector<8x1x1xf32>
    %13 = vector.broadcast %12 : vector<8x1x1xf32> to vector<8x8x1xf32>
    %14 = arith.divf %10, %13 : vector<8x8x1xf32>
    %15 = vector.broadcast %14 : vector<8x8x1xf32> to vector<8x8x32xf32>
    %16 = arith.mulf %0, %15 : vector<8x8x32xf32>
    %cst_7 = arith.constant dense<0.000000e+00> : vector<8x32xf32>
    %17 = vector.multi_reduction <add>, %16, %cst_7 [1] : vector<8x8x32xf32> to vector<8x32xf32>
    %c0_8 = arith.constant 0 : index
    %c0_9 = arith.constant 0 : index
    %18 = vector.load %arg3[%c0_8, %c0_9] : memref<8x32xf32, #tpu.memory_space<vmem>>, vector<8x32xf32>
    tpu.vector_store %arg3[%c0_8, %c0_9], %17 {strides = array<i32>} : memref<8x32xf32, #tpu.memory_space<vmem>>, vector<8x32xf32>,
    return
  }
  func.func @transform_0(%arg0: i32) -> (i32, i32, i32) {
    %c0_i32 = arith.constant 0 : i32
    %c0_i32_0 = arith.constant 0 : i32
    %c0_i32_1 = arith.constant 0 : i32
    return %arg0, %c0_i32, %c0_i32_0 : i32, i32, i32
  }
  func.func @transform_1(%arg0: i32) -> (i32, i32, i32) {
    %c0_i32 = arith.constant 0 : i32
    %c0_i32_0 = arith.constant 0 : i32
    %c0_i32_1 = arith.constant 0 : i32
    %c0_i32_2 = arith.constant 0 : i32
    return %c0_i32, %c0_i32_0, %c0_i32_1 : i32, i32, i32
  }
  func.func @transform_2(%arg0: i32) -> (i32, i32) {
    %c0_i32 = arith.constant 0 : i32
    %c0_i32_0 = arith.constant 0 : i32
    return %arg0, %c0_i32 : i32, i32
  }
}

</mosaic_0001>

<bundles_post_ra>
// kernel: tpu_custom_call.1
= control target key start
LH: loop header
LB: loop body
LE: loop exit
PB: predicated region body
PF: predicated region fallthrough
CT: control target
= control target key end

     0   :  { %7 = vsyncpa [#allocation3], 0  ;;  %s533_s0 = inlined_call_operand.hbm [shape: f32[8,8,32], index: 0, kind: input, shape index: {}]   ;;  %s534_s1 = inlined_call_operand.vmem [shape: f32[1,1,32], index: 1, kind: input, shape index: {}]   ;;  %s535_s2 = inlined_call_operand.hbm [shape: f32[8,32], index: 2, kind: output, shape index: {}]  }
   0x1   :  { %8 = vsyncpa [#allocation4], 0  ;;  %s398_s9 = smov [#allocation2]   ;;  %s350_s13 = scalar_lea.hbm %s533_s0, 1024 }
   0x2   :  { %s14_s10 = sshll.u32 %s398_s9, 4  ;;  %p351_p0 = scmp.ne.s32.totalorder %s533_s0, %s350_s13  ;;  %s15_s10 = int_to_ptr.vmem [resolvable:$true] %s14_s10 }
   0x3   :  { %p354_p1 = scmp.lt.u32.totalorder %s350_s13, %s533_s0 }
   0x5   :  { %p356_p2 = pnand %p354_p1, %p351_p0 }
   0x7   :  { %359 = shalt.err (!%p356_p2)
}
   0x8   :  { %s360_s18 = scalar_lea.vmem %s15_s10, 1024  ;;  %p365_p4 = scmp.lt.s32.totalorder %s15_s10, %s15_s10 }
   0x9   :  { %p361_p3 = scmp.ne.s32.totalorder %s15_s10, %s360_s18  ;;  %p366_p5 = scmp.lt.s32.totalorder %s360_s18, %s360_s18 }
   0xb   :  { %p367_p6 = por %p366_p5, %p365_p4 }
   0xd   :  { %p368_p7 = pnand %p367_p6, %p361_p3 }
   0xf   :  { %371 = shalt.err (!%p368_p7)
}
  0x10   :  { %s399_s19 = smov 128   ;;  %s400_s20 = smov 8  }
  0x11   :  { %20 = dma.hbm_to_vmem [thread:$0]  %s533_s0, 1024, %s15_s10, [#allocation3], %s399_s19, %s399_s19, %s400_s20  }
  0x12   :  { %394 = dma.done.wait [#allocation3], 1024  }
  0x13   :  { %395 = vsyncadd [#allocation3], 4294966272  ;;  %v429_v0 = vld [vmem:[#allocation2 + $0x10] sm:$0xff]  ;;  %v313_v1 = vld [vmem:[%s534_s1] ss:$0 sm:$0xff]  ;;  %vm49_vm0 = vcmask 261120  }
  0x14   :  { %v434_v2 = vld [vmem:[#allocation2] sm:$0xff]  ;;  %v43_v3 = vmul.f32 %v313_v1, %v429_v0  ;;  %v438_v5 = vld [vmem:[#allocation2 + $0x18] sm:$0xff]  ;;  %v440_v6 = vld [vmem:[#allocation2 + $0x8] sm:$0xff]  ;;  %vm282_vm1 = vcmask 1041409   ;;  %vm284_vm2 = vcmask 1042434   ;;  %vm286_vm3 = vcmask 1043459  }
  0x15   :  { %v41_v4 = vmul.f32 %v313_v1, %v434_v2  ;;  %v44_v7 = vmul.f32 %v313_v1, %v438_v5  ;;  %v42_v8 = vmul.f32 %v313_v1, %v440_v6  ;;  %v444_v9 = vld [vmem:[#allocation2 + $0x28] sm:$0xff]  ;;  %v446_v10 = vld [vmem:[#allocation2 + $0x20] sm:$0xff]  ;;  %v454_v17 = vld [vmem:[#allocation2 + $0x38] sm:$0xff]  ;;  %vm288_vm4 = vcmask 1044484   ;;  %s401_s0 = smov [#allocation5]  }
  0x16   :  { %v56_v11 = vsel %vm49_vm0, %v43_v3, 0.0  ;;  %v46_v15 = vmul.f32 %v313_v1, %v444_v9  ;;  %v45_v16 = vmul.f32 %v313_v1, %v446_v10  ;;  %v456_v18 = vld [vmem:[#allocation2 + $0x30] sm:$0xff]  ;;  %v48_v21 = vmul.f32 %v313_v1, %v454_v17  ;;  %s304_s1 = sshll.u32 %s401_s0, 4  ;;  %s305_s1 = int_to_ptr.vmem [resolvable:$true] %s304_s1 }
  0x17   :  { %v50_v12 = vsel %vm49_vm0, %v41_v4, 0.0  ;;  %57 = vadd.xlane.f32.xlu1 %v56_v11  ;;  %v59_v13 = vsel %vm49_vm0, %v44_v7, 0.0  ;;  %v53_v14 = vsel %vm49_vm0, %v42_v8, 0.0  ;;  %v47_v22 = vmul.f32 %v313_v1, %v456_v18  ;;  %s372_s25 = scalar_lea.vmem %s305_s1, 128  ;;  %p377_p9 = scmp.lt.s32.totalorder %s305_s1, %s305_s1 }
  0x18   :  { %51 = vadd.xlane.f32.xlu0 %v50_v12  ;;  %v65_v19 = vsel %vm49_vm0, %v46_v15, 0.0  ;;  %v62_v20 = vsel %vm49_vm0, %v45_v16, 0.0  ;;  %v71_v23 = vsel %vm49_vm0, %v48_v21, 0.0  ;;  %vm290_vm5 = vcmask 1045509   ;;  %p373_p8 = scmp.ne.s32.totalorder %s305_s1, %s372_s25  ;;  %p378_p10 = scmp.lt.s32.totalorder %s372_s25, %s372_s25 }
  0x19   :  { %v68_v24 = vsel %vm49_vm0, %v47_v22, 0.0  ;;  %vm292_vm6 = vcmask 1046534   ;;  %vm294_vm7 = vcmask 1047559  }
  0x1a   :  { %p379_p11 = por %p378_p10, %p377_p9 }
  0x1b   :  { %60 = vadd.xlane.f32.xlu1 %v59_v13 }
  0x1c   :  { %54 = vadd.xlane.f32.xlu0 %v53_v14  ;;  %p380_p12 = pnand %p379_p11, %p373_p8 }
  0x1f   :  { %66 = vadd.xlane.f32.xlu1 %v65_v19 }
  0x20   :  { %63 = vadd.xlane.f32.xlu0 %v62_v20 }
  0x23   :  { %72 = vadd.xlane.f32.xlu1 %v71_v23 }
  0x24   :  { %69 = vadd.xlane.f32.xlu0 %v68_v24 }
  0xa4   :  { %v58_v25 = vpop.xlane.xlu1 %57 }
  0xa5   :  { %v52_v26 = vpop.xlane.xlu0 %51  ;;  %v86_v27 = vrot.slane %v58_v25, 4 }
  0xa6   :  { %v74_v28 = vrot.slane %v52_v26, 4 }
  0xa7   :  { %v87_v29 = vmax.f32 %v58_v25, %v86_v27 }
  0xa8   :  { %v75_v30 = vmax.f32 %v52_v26, %v74_v28  ;;  %v61_v31 = vpop.xlane.xlu1 %60 }
  0xa9   :  { %v55_v32 = vpop.xlane.xlu0 %54  ;;  %v88_v33 = vrot.slane %v87_v29, 2  ;;  %v92_v35 = vrot.slane %v61_v31, 4 }
  0xaa   :  { %v76_v34 = vrot.slane %v75_v30, 2  ;;  %v80_v36 = vrot.slane %v55_v32, 4 }
  0xab   :  { %v89_v37 = vmax.f32 %v87_v29, %v88_v33  ;;  %v93_v39 = vmax.f32 %v61_v31, %v92_v35 }
  0xac   :  { %v77_v38 = vmax.f32 %v75_v30, %v76_v34  ;;  %v81_v40 = vmax.f32 %v55_v32, %v80_v36  ;;  %v67_v41 = vpop.xlane.xlu1 %66 }
  0xad   :  { %v64_v42 = vpop.xlane.xlu0 %63  ;;  %v90_v43 = vrot.slane %v89_v37, 1  ;;  %v94_v45 = vrot.slane %v93_v39, 2  ;;  %v104_v47 = vrot.slane %v67_v41, 4 }
  0xae   :  { %v78_v44 = vrot.slane %v77_v38, 1  ;;  %v82_v46 = vrot.slane %v81_v40, 2  ;;  %v98_v48 = vrot.slane %v64_v42, 4 }
  0xaf   :  { %v91_v49 = vmax.f32 %v89_v37, %v90_v43  ;;  %v95_v51 = vmax.f32 %v93_v39, %v94_v45  ;;  %v105_v53 = vmax.f32 %v67_v41, %v104_v47 }
  0xb0   :  { %v79_v50 = vmax.f32 %v77_v38, %v78_v44  ;;  %v83_v52 = vmax.f32 %v81_v40, %v82_v46  ;;  %v99_v54 = vmax.f32 %v64_v42, %v98_v48  ;;  %v73_v55 = vpop.xlane.xlu1 %72 }
  0xb1   :  { %v70_v56 = vpop.xlane.xlu0 %69  ;;  %v124_v57 = vsub.f32 %v58_v25, %v91_v49  ;;  %v96_v59 = vrot.slane %v95_v51, 1  ;;  %v106_v61 = vrot.slane %v105_v53, 2  ;;  %v116_v63 = vrot.slane %v73_v55, 4 }
  0xb2   :  { %v122_v58 = vsub.f32 %v52_v26, %v79_v50  ;;  %v84_v60 = vrot.slane %v83_v52, 1  ;;  %v100_v62 = vrot.slane %v99_v54, 2  ;;  %v110_v1 = vrot.slane %v70_v56, 4 }
  0xb3   :  { %v134_v3 = vmul.f32 1.442695, %v124_v57  ;;  %v97_v7 = vmax.f32 %v95_v51, %v96_v59  ;;  %v107_v11 = vmax.f32 %v105_v53, %v106_v61  ;;  %v117_v13 = vmax.f32 %v73_v55, %v116_v63 }
  0xb4   :  { %v130_v4 = vmul.f32 1.442695, %v122_v58  ;;  %v85_v8 = vmax.f32 %v83_v52, %v84_v60  ;;  %v101_v12 = vmax.f32 %v99_v54, %v100_v62  ;;  %v111_v14 = vmax.f32 %v70_v56, %v110_v1 }
  0xb5   :  { %318 = vpow2.f32 %v134_v3  ;;  %v125_v15 = vsub.f32 %v61_v31, %v97_v7  ;;  %v108_v19 = vrot.slane %v107_v11, 1  ;;  %v118_v21 = vrot.slane %v117_v13, 2 }
  0xb6   :  { %v123_v16 = vsub.f32 %v55_v32, %v85_v8  ;;  %320 = vpow2.f32 %v130_v4  ;;  %v102_v20 = vrot.slane %v101_v12, 1  ;;  %v112_v24 = vrot.slane %v111_v14, 2 }
  0xb7   :  { %v136_v22 = vmul.f32 1.442695, %v125_v15  ;;  %v109_v25 = vmax.f32 %v107_v11, %v108_v19  ;;  %v119_v27 = vmax.f32 %v117_v13, %v118_v21 }
  0xb8   :  { %v132_v23 = vmul.f32 1.442695, %v123_v16  ;;  %v103_v26 = vmax.f32 %v101_v12, %v102_v20  ;;  %v113_v28 = vmax.f32 %v111_v14, %v112_v24 }
  0xb9   :  { %322 = vpow2.f32 %v136_v22  ;;  %v127_v29 = vsub.f32 %v67_v41, %v109_v25  ;;  %v120_v33 = vrot.slane %v119_v27, 1 }
  0xba   :  { %324 = vpow2.f32 %v132_v23  ;;  %v126_v30 = vsub.f32 %v64_v42, %v103_v26  ;;  %v114_v34 = vrot.slane %v113_v28, 1 }
  0xbb   :  { %v140_v35 = vmul.f32 1.442695, %v127_v29  ;;  %v121_v32 = vmax.f32 %v119_v27, %v120_v33 }
  0xbc   :  { %v138_v31 = vmul.f32 1.442695, %v126_v30  ;;  %v115_v36 = vmax.f32 %v113_v28, %v114_v34 }
  0xbd   :  { %326 = vpow2.f32 %v140_v35  ;;  %v129_v37 = vsub.f32 %v73_v55, %v121_v32 }
  0xbe   :  { %328 = vpow2.f32 %v138_v31  ;;  %v128_v39 = vsub.f32 %v70_v56, %v115_v36 }
  0xbf   :  { %v464_v38 = vpop.eup %318  ;;  %v144_v44 = vmul.f32 1.442695, %v129_v37 }
  0xc0   :  { %v466_v40 = vpop.eup %320  ;;  %v158_v43 = vrot.slane %v464_v38, 4  ;;  %v142_v42 = vmul.f32 1.442695, %v128_v39 }
  0xc1   :  { %v146_v41 = vrot.slane %v466_v40, 4  ;;  %330 = vpow2.f32 %v144_v44 }
  0xc2   :  { %v159_v45 = vadd.f32 %v464_v38, %v158_v43  ;;  %332 = vpow2.f32 %v142_v42 }
  0xc3   :  { %v471_v46 = vpop.eup %322  ;;  %v147_v47 = vadd.f32 %v466_v40, %v146_v41 }
  0xc4   :  { %v474_v48 = vpop.eup %324  ;;  %v160_v49 = vrot.slane %v159_v45, 2  ;;  %v164_v50 = vrot.slane %v471_v46, 4 }
  0xc5   :  { %v148_v51 = vrot.slane %v147_v47, 2  ;;  %v152_v52 = vrot.slane %v474_v48, 4 }
  0xc6   :  { %v161_v53 = vadd.f32 %v160_v49, %v159_v45  ;;  %v165_v54 = vadd.f32 %v471_v46, %v164_v50 }
  0xc7   :  { %v149_v55 = vadd.f32 %v148_v51, %v147_v47  ;;  %v153_v56 = vadd.f32 %v474_v48, %v152_v52  ;;  %v480_v57 = vpop.eup %326 }
  0xc8   :  { %v162_v58 = vrot.slane %v161_v53, 1  ;;  %v166_v59 = vrot.slane %v165_v54, 2  ;;  %v482_v60 = vpop.eup %328  ;;  %v176_v63 = vrot.slane %v480_v57, 4 }
  0xc9   :  { %v150_v61 = vrot.slane %v149_v55, 1  ;;  %v154_v62 = vrot.slane %v153_v56, 2  ;;  %v170_v4 = vrot.slane %v482_v60, 4 }
  0xca   :  { %v163_v1 = vadd.f32 %v162_v58, %v161_v53  ;;  %v167_v3 = vadd.f32 %v166_v59, %v165_v54  ;;  %v177_v11 = vadd.f32 %v480_v57, %v176_v63 }
  0xcb   :  { %v151_v7 = vadd.f32 %v150_v61, %v149_v55  ;;  %v155_v8 = vadd.f32 %v154_v62, %v153_v56  ;;  %v487_v12 = vpop.eup %330  ;;  %v171_v14 = vadd.f32 %v482_v60, %v170_v4 }
  0xcc   :  { %334 = vrcp.f32 %v163_v1  ;;  %v168_v13 = vrot.slane %v167_v3, 1  ;;  %v490_v15 = vpop.eup %332  ;;  %v178_v19 = vrot.slane %v177_v11, 2  ;;  %v188_v20 = vrot.slane %v487_v12, 4 }
  0xcd   :  { %336 = vrcp.f32 %v151_v7  ;;  %v156_v16 = vrot.slane %v155_v8, 1  ;;  %v172_v22 = vrot.slane %v171_v14, 2  ;;  %v182_v23 = vrot.slane %v490_v15, 4 }
  0xce   :  { %v169_v21 = vadd.f32 %v168_v13, %v167_v3  ;;  %v179_v25 = vadd.f32 %v178_v19, %v177_v11  ;;  %v189_v26 = vadd.f32 %v487_v12, %v188_v20 }
  0xcf   :  { %v157_v24 = vadd.f32 %v156_v16, %v155_v8  ;;  %v173_v27 = vadd.f32 %v172_v22, %v171_v14  ;;  %v183_v28 = vadd.f32 %v490_v15, %v182_v23 }
  0xd0   :  { %338 = vrcp.f32 %v169_v21  ;;  %v180_v29 = vrot.slane %v179_v25, 1  ;;  %v190_v30 = vrot.slane %v189_v26, 2 }
  0xd1   :  { %340 = vrcp.f32 %v157_v24  ;;  %v174_v33 = vrot.slane %v173_v27, 1  ;;  %v184_v34 = vrot.slane %v183_v28, 2 }
  0xd2   :  { %v181_v35 = vadd.f32 %v180_v29, %v179_v25  ;;  %v191_v31 = vadd.f32 %v190_v30, %v189_v26 }
  0xd3   :  { %v175_v32 = vadd.f32 %v174_v33, %v173_v27  ;;  %v185_v36 = vadd.f32 %v184_v34, %v183_v28 }
  0xd4   :  { %v192_v37 = vrot.slane %v191_v31, 1  ;;  %342 = vrcp.f32 %v181_v35 }
  0xd5   :  { %344 = vrcp.f32 %v175_v32  ;;  %v186_v43 = vrot.slane %v185_v36, 1 }
  0xd6   :  { %v335_v39 = vpop.eup %334  ;;  %v193_v41 = vadd.f32 %v192_v37, %v191_v31 }
  0xd7   :  { %v337_v44 = vpop.eup %336  ;;  %v199_v42 = vmul.f32 %v335_v39, %v464_v38  ;;  %v187_v47 = vadd.f32 %v186_v43, %v185_v36 }
  0xd8   :  { %v195_v45 = vmul.f32 %v337_v44, %v466_v40  ;;  %346 = vrcp.f32 %v193_v41 }
  0xd9   :  { %v212_v49 = vmul.f32 %v199_v42, %v429_v0  ;;  %348 = vrcp.f32 %v187_v47 }
  0xda   :  { %v339_v50 = vpop.eup %338  ;;  %v210_v51 = vmul.f32 %v195_v45, %v434_v2 }
  0xdb   :  { %v341_v52 = vpop.eup %340  ;;  %v201_v53 = vmul.f32 %v339_v50, %v471_v46  ;;  %v232_v54 = vsel %vm49_vm0, %v212_v49, 0.0 }
  0xdc   :  { %v197_v55 = vmul.f32 %v341_v52, %v474_v48  ;;  %v218_v56 = vsel %vm49_vm0, %v210_v51, 0.0  ;;  %v233_v38 = vrot.slane %v232_v54, 4 }
  0xdd   :  { %v213_v40 = vmul.f32 %v201_v53, %v438_v5  ;;  %v219_v58 = vrot.slane %v218_v56, 4 }
  0xde   :  { %v211_v59 = vmul.f32 %v197_v55, %v440_v6  ;;  %v234_v0 = vadd.f32 %v233_v38, %v232_v54  ;;  %v343_v61 = vpop.eup %342 }
  0xdf   :  { %v220_v62 = vadd.f32 %v219_v58, %v218_v56  ;;  %v239_v2 = vsel %vm49_vm0, %v213_v40, 0.0  ;;  %v345_v63 = vpop.eup %344  ;;  %v205_v46 = vmul.f32 %v343_v61, %v480_v57 }
  0xe0   :  { %v225_v1 = vsel %vm49_vm0, %v211_v59, 0.0  ;;  %v235_v3 = vrot.slane %v234_v0, 2  ;;  %v240_v48 = vrot.slane %v239_v2, 4  ;;  %v203_v4 = vmul.f32 %v345_v63, %v482_v60 }
  0xe1   :  { %v221_v7 = vrot.slane %v220_v62, 2  ;;  %v226_v8 = vrot.slane %v225_v1, 4  ;;  %v215_v5 = vmul.f32 %v205_v46, %v444_v9 }
  0xe2   :  { %v241_v11 = vadd.f32 %v240_v48, %v239_v2  ;;  %v347_v6 = vpop.eup %346  ;;  %v214_v13 = vmul.f32 %v203_v4, %v446_v10  ;;  %v236_v57 = vadd.f32 %v235_v3, %v234_v0 }
  0xe3   :  { %v222_v14 = vadd.f32 %v221_v7, %v220_v62  ;;  %v227_v16 = vadd.f32 %v226_v8, %v225_v1  ;;  %v349_v19 = vpop.eup %348  ;;  %v209_v20 = vmul.f32 %v347_v6, %v487_v12  ;;  %v253_v22 = vsel %vm49_vm0, %v215_v5, 0.0 }
  0xe4   :  { %v242_v21 = vrot.slane %v241_v11, 2  ;;  %v207_v23 = vmul.f32 %v349_v19, %v490_v15  ;;  %v246_v24 = vsel %vm49_vm0, %v214_v13, 0.0  ;;  %v254_v29 = vrot.slane %v253_v22, 4 }
  0xe5   :  { %v228_v60 = vrot.slane %v227_v16, 2  ;;  %v217_v9 = vmul.f32 %v209_v20, %v454_v17  ;;  %v247_v26 = vrot.slane %v246_v24, 4  ;;  %v223_v27 = vrot.slane %v222_v14, 1 }
  0xe6   :  { %v243_v25 = vadd.f32 %v242_v21, %v241_v11  ;;  %v216_v10 = vmul.f32 %v207_v23, %v456_v18  ;;  %v237_v30 = vrot.slane %v236_v57, 1  ;;  %v255_v31 = vadd.f32 %v254_v29, %v253_v22 }
  0xe7   :  { %v229_v28 = vadd.f32 %v228_v60, %v227_v16  ;;  %v248_v33 = vadd.f32 %v247_v26, %v246_v24  ;;  %v267_v34 = vsel %vm49_vm0, %v217_v9, 0.0  ;;  %v224_v17 = vadd.f32 %v223_v27, %v222_v14 }
  0xe8   :  { %v244_v12 = vrot.slane %v243_v25, 1  ;;  %v260_v15 = vsel %vm49_vm0, %v216_v10, 0.0  ;;  %v268_v32 = vrot.slane %v267_v34, 4  ;;  %v256_v18 = vrot.slane %v255_v31, 2 }
  0xe9   :  { %v230_v35 = vrot.slane %v229_v28, 1  ;;  %v249_v36 = vrot.slane %v248_v33, 2  ;;  %v261_v37 = vrot.slane %v260_v15, 4  ;;  %v238_v44 = vadd.f32 %v237_v30, %v236_v57 }
  0xea   :  { %v269_v43 = vadd.f32 %v268_v32, %v267_v34  ;;  %v245_v45 = vadd.f32 %v244_v12, %v243_v25  ;;  %v257_v47 = vadd.f32 %v256_v18, %v255_v31 }
  0xeb   :  { %v231_v39 = vadd.f32 %v230_v35, %v229_v28  ;;  %v250_v41 = vadd.f32 %v249_v36, %v248_v33  ;;  %v262_v42 = vadd.f32 %v261_v37, %v260_v15 }
  0xec   :  { %v270_v49 = vrot.slane %v269_v43, 2  ;;  %v258_v54 = vrot.slane %v257_v47, 1 }
  0xed   :  { %v283_v50 = vsel %vm282_vm1, %v231_v39, %v224_v17  ;;  %v251_v51 = vrot.slane %v250_v41, 1  ;;  %v263_v52 = vrot.slane %v262_v42, 2 }
  0xee   :  { %v285_v53 = vsel %vm284_vm2, %v238_v44, %v283_v50  ;;  %v271_v55 = vadd.f32 %v270_v49, %v269_v43  ;;  %v259_v58 = vadd.f32 %v258_v54, %v257_v47 }
  0xef   :  { %v287_v56 = vsel %vm286_vm3, %v245_v45, %v285_v53  ;;  %v252_v38 = vadd.f32 %v251_v51, %v250_v41  ;;  %v264_v40 = vadd.f32 %v263_v52, %v262_v42 }
  0xf0   :  { %v272_v59 = vrot.slane %v271_v55, 1 }
  0xf1   :  { %v265_v0 = vrot.slane %v264_v40, 1  ;;  %v289_v61 = vsel %vm288_vm4, %v252_v38, %v287_v56 }
  0xf2   :  { %v273_v62 = vadd.f32 %v272_v59, %v271_v55  ;;  %v291_v63 = vsel %vm290_vm5, %v259_v58, %v289_v61 }
  0xf3   :  { %v266_v2 = vadd.f32 %v265_v0, %v264_v40 }
  0xf5   :  { %v293_v46 = vsel %vm292_vm6, %v266_v2, %v291_v63 }
  0xf6   :  { %v295_v1 = vsel %vm294_vm7, %v273_v62, %v293_v46 }
  0xf7   :  { %297 = vst.msk [vmem:[#allocation5] sm:$0xff] %vm49_vm0, %v295_v1 }
  0xf8   :  { %383 = shalt.err (!%p380_p12)
}
  0xf9   :  { %s384_s28 = scalar_lea.hbm %s535_s2, 128 }
  0xfa   :  { %p385_p13 = scmp.ne.s32.totalorder %s535_s2, %s384_s28  ;;  %p388_p0 = scmp.lt.u32.totalorder %s384_s28, %s535_s2 }
  0xfc   :  { %p390_p1 = pnand %p388_p0, %p385_p13 }
  0xfe   :  { %393 = shalt.err (!%p390_p1)
}
  0xff   :  { %307 = dma.vmem_to_hbm [thread:$0]  %s305_s1, 128, %s535_s2, [#allocation4]  }
 0x100   :  { %396 = dma.done.wait [#allocation4], 128  }
 0x101   :  { %397 = vsyncadd [#allocation4], 4294967168 }
 0x102   :  { %311 = vsyncpa [#allocation3], 1 }
 0x103   :  { %312 = vsyncpa [#allocation4], 1 }

</bundles_post_ra>
